<compile_context>
chip_gen: v5e
topology: v5e:2x2
jax: 0.10.0
libtpu: 0.0.40
codegen_flags: <defaults>
</compile_context>

<pallas_src>
import jax
import jax.numpy as jnp
from jax.experimental import pallas as pl
from jax.experimental.pallas import tpu as pltpu

LN_EPS = 1e-5


def _cdiv(a, b):
    return -(-a // b)


def _round_up(a, b):
    return _cdiv(a, b) * b


# ---------------------------------------------------------------------------
# Kernel body: LayerNorm (affine folded into W/b) -> matmul -> bias -> tanh.
# ---------------------------------------------------------------------------
def _cfe_kernel(x_ref, w_ref, b_ref, o_ref):
    # x_ref: (TM, D_in)   w_ref: (D_in, TN)   b_ref: (1, TN)   o_ref: (TM, TN)
    x = x_ref[...].astype(jnp.float32)

    # Two-pass LayerNorm statistics over the (unpadded) feature axis, in f32.
    mean = jnp.mean(x, axis=-1, keepdims=True)
    xc = x - mean
    var = jnp.mean(xc * xc, axis=-1, keepdims=True)
    xn = xc * jax.lax.rsqrt(var + LN_EPS)

    # MXU matmul in the weight's native dtype (bf16 weights stay bf16); f32 accumulate.
    y = jnp.dot(xn.astype(w_ref.dtype), w_ref[...],
                preferred_element_type=jnp.float32)
    y = y + b_ref[...].astype(jnp.float32)

    # Tanh (EUP). Dropout is identity in eval mode.
    o_ref[...] = jnp.tanh(y).astype(o_ref.dtype)


# ---------------------------------------------------------------------------
# Sizing helpers.
# ---------------------------------------------------------------------------
def _vmem_limit_bytes():
    try:
        cap = pltpu.get_tpu_info().vmem_capacity_bytes
    except Exception:
        cap = 64 * 1024 * 1024  # conservative: v7x per-TC physical VMEM
    # ~3/4 of physical, capped at 100 MiB: ~96 MiB on v5e/v6e (128 MiB), ~48 MiB on v7x.
    return max(32 * 1024 * 1024, min(int(cap * 3 // 4), 100 * 1024 * 1024))


def _pick_tile_n(d_in, d_out, w_itemsize, budget):
    """Keep the whole weight resident unless it would eat > ~1/4 of the VMEM budget."""
    if d_out <= 256 or d_in * d_out * w_itemsize <= budget // 4:
        return d_out
    tn = 256  # multiple of 256 fills the 2x256^2 MXU on v6e/v7x
    while (tn * 2 < d_out) and (2 * d_in * (tn * 2) * w_itemsize <= budget // 4):
        tn *= 2
    return tn


def _pick_tile_rows(n_rows, d_in, tile_n, x_itemsize, w_itemsize, out_itemsize,
                    w_bufs, budget):
    cap = 2048 if (d_in <= 512 and tile_n <= 512) else 1024
    cap = min(cap, _round_up(n_rows, 8))
    if n_rows > 8:
        # Guarantee >= 2 grid steps so both v7x TensorCores get work.
        cap = min(cap, _round_up(_cdiv(n_rows, 2), 8))
    t = max(cap, 8)

    def footprint(tr):
        return (2 * tr * d_in * x_itemsize          # double-buffered x tiles
                + 2 * tr * tile_n * out_itemsize    # double-buffered out tiles
                + w_bufs * d_in * tile_n * w_itemsize
                + w_bufs * tile_n * 4               # bias
                + 3 * tr * d_in * 4                 # f32 LN temporaries (x, xc/xn, cast)
                + tr * tile_n * 4)                  # f32 matmul accumulator

    while t > 8 and footprint(t) > budget:
        t = max(8, _round_up(t // 2, 8))
    return t


# ---------------------------------------------------------------------------
# Parameter folding (call once per layer, NOT per forward): exact rewrite
#   (xn*g + b) @ W + c == xn @ (g[:,None]*W) + (b @ W + c)
# Pass bf16 `w` if the precision budget allows: halves weight HBM/VMEM traffic
# and uses the fast bf16 MXU path on all generations.
# ---------------------------------------------------------------------------
def fold_layernorm_into_linear(gamma, beta, w, bias):
    w_f32 = w.astype(jnp.float32)
    w_eff = (gamma.astype(jnp.float32)[:, None] * w_f32).astype(w.dtype)
    bias_eff = (beta.astype(jnp.float32) @ w_f32 + bias.astype(jnp.float32))
    return w_eff, bias_eff.reshape(1, -1).astype(jnp.float32)


# ---------------------------------------------------------------------------
# Fused forward on pre-folded parameters.
# ---------------------------------------------------------------------------
def common_feature_extractor_folded(x, w_eff, bias_eff, *, tile_rows=None, tile_n=None):
    """x: (..., D_in) -> (..., D_out). Fused LayerNorm+Linear+Tanh Pallas kernel."""
    orig_shape = x.shape
    d_in = orig_shape[-1]
    d_out = w_eff.shape[1]

    x2 = x.reshape(-1, d_in)
    n_rows = x2.shape[0]

    vmem_limit = _vmem_limit_bytes()
    budget = int(vmem_limit * 0.8)

    if tile_n is None:
        tile_n = _pick_tile_n(d_in, d_out, w_eff.dtype.itemsize, budget)
    num_n = _cdiv(d_out, tile_n)

    # Weight/bias are grid-invariant only when there is no N axis.
    single_buffer_consts = (num_n == 1)
    w_bufs = 1 if single_buffer_consts else 2

    if tile_rows is None:
        tile_rows = _pick_tile_rows(n_rows, d_in, tile_n,
                                    x2.dtype.itemsize, w_eff.dtype.itemsize,
                                    x.dtype.itemsize, w_bufs, budget)
    assert tile_rows % 8 == 0, "tile_rows must be a multiple of 8"

    grid = (_cdiv(n_rows, tile_rows), num_n)

    def build(use_single_buffer):
        const_kw = {"pipeline_mode": pl.Buffered(1)} if use_single_buffer else {}
        in_specs = [
            pl.BlockSpec((tile_rows, d_in), lambda i, j: (i, 0)),
            pl.BlockSpec((d_in, tile_n), lambda i, j: (0, j), **const_kw),
            pl.BlockSpec((1, tile_n), lambda i, j: (0, j), **const_kw),
        ]
        out_specs = pl.BlockSpec((tile_rows, tile_n), lambda i, j: (i, j))
        return pl.pallas_call(
            _cfe_kernel,
            out_shape=jax.ShapeDtypeStruct((n_rows, d_out), x.dtype),
            grid_spec=pltpu.PrefetchScalarGridSpec(
                num_scalar_prefetch=0,
                grid=grid,
                in_specs=in_specs,
                out_specs=out_specs,
            ),
            compiler_params=pltpu.CompilerParams(
                dimension_semantics=("parallel", "parallel"),
                vmem_limit_bytes=vmem_limit,
            ),
        )

    if single_buffer_consts:
        try:
            out = build(True)(x2, w_eff, bias_eff)
        except Exception:
            # This JAX/Mosaic build rejects single-buffered pipeline_mode; fall back.
            out = build(False)(x2, w_eff, bias_eff)
    else:
        out = build(False)(x2, w_eff, bias_eff)

    return out.reshape(*orig_shape[:-1], d_out)


def common_feature_extractor(x, gamma, beta, w, bias, **kw):
    """Convenience wrapper. For repeated calls, fold once and reuse the folded params."""
    w_eff, bias_eff = fold_layernorm_into_linear(gamma, beta, w, bias)
    return common_feature_extractor_folded(x, w_eff, bias_eff, **kw)


# ---------------------------------------------------------------------------
# Reference & demo.
# ---------------------------------------------------------------------------
def _reference(x, gamma, beta, w, bias):
    mean = jnp.mean(x, axis=-1, keepdims=True)
    var = jnp.mean((x - mean) ** 2, axis=-1, keepdims=True)
    xn = (x - mean) / jnp.sqrt(var + LN_EPS)
    xn = xn * gamma + beta
    return jnp.tanh(xn @ w + bias)


if __name__ == "__main__":
    batch, seq, input_dim, output_dim = 2, 8, 32, 32

    key = jax.random.PRNGKey(0)
    kx, kg, kb, kw, kbb = jax.random.split(key, 5)

    x = jax.random.normal(kx, (batch, seq, input_dim), dtype=jnp.float32)

    # Non-trivial LayerNorm affine params to exercise the gamma/beta folding path.
    gamma = 1.0 + 0.1 * jax.random.normal(kg, (input_dim,), dtype=jnp.float32)
    beta = 0.1 * jax.random.normal(kb, (input_dim,), dtype=jnp.float32)
    # nn.Linear weight is (out, in) with uniform(-1/sqrt(in), 1/sqrt(in)); stored (in, out).
    limit = 1.0 / jnp.sqrt(jnp.float32(input_dim))
    w = jax.random.uniform(kw, (input_dim, output_dim), dtype=jnp.float32,
                           minval=-limit, maxval=limit)
    bias = jax.random.uniform(kbb, (output_dim,), dtype=jnp.float32,
                              minval=-limit, maxval=limit)

    # Fold the LayerNorm affine into the linear layer ONCE (hoisted out of the call path).
    w_eff, bias_eff = fold_layernorm_into_linear(gamma, beta, w, bias)
    w_eff = jax.block_until_ready(w_eff)

    out = common_feature_extractor_folded(x, w_eff, bias_eff)
    out = jax.block_until_ready(out)

    ref = _reference(x, gamma, beta, w, bias)
    assert out.shape == (batch, seq, output_dim)
    assert jnp.allclose(out, ref, atol=1e-5, rtol=1e-5), float(jnp.max(jnp.abs(out - ref)))

    print("KERNEL_OK")
</pallas_src>

<mosaic_0001>
module attributes {stable_mosaic.version = 11 : i64} {
  func.func @_cfe_kernel(%arg0: i32, %arg1: i32, %arg2: memref<8x32xf32, #tpu.memory_space<vmem>>, %arg3: memref<32x32xf32, #tpu.memory_space<vmem>>, %arg4: memref<1x32xf32, #tpu.memory_space<vmem>>, %arg5: memref<8x32xf32, #tpu.memory_space<vmem>>) attributes {dimension_semantics = [#tpu.dimension_semantics<parallel>, #tpu.dimension_semantics<parallel>], iteration_bounds = array<i64: 2, 1>, scalar_prefetch = 0 : i64, scratch_operands = 0 : i64, tpu.core_type = #tpu.core_type<tc>, window_params = [{transform_indices = @transform_0, window_bounds = array<i64: 8, 32>}, {pipeline_mode = #tpu.pipeline_mode<synchronous>, transform_indices = @transform_1, window_bounds = array<i64: 32, 32>}, {pipeline_mode = #tpu.pipeline_mode<synchronous>, transform_indices = @transform_2, window_bounds = array<i64: 1, 32>}, {transform_indices = @transform_3, window_bounds = array<i64: 8, 32>}]} {
    %c0 = arith.constant 0 : index
    %c0_0 = arith.constant 0 : index
    %0 = vector.load %arg2[%c0, %c0_0] : memref<8x32xf32, #tpu.memory_space<vmem>>, vector<8x32xf32>
    %cst = arith.constant dense<0.000000e+00> : vector<8xf32>
    %1 = vector.multi_reduction <add>, %0, %cst [1] : vector<8x32xf32> to vector<8xf32>
    %2 = vector.shape_cast %1 : vector<8xf32> to vector<8x1xf32>
    %cst_1 = arith.constant 3.200000e+01 : f32
    %3 = vector.broadcast %cst_1 : f32 to vector<8x1xf32>
    %4 = arith.divf %2, %3 : vector<8x1xf32>
    %5 = vector.broadcast %4 : vector<8x1xf32> to vector<8x32xf32>
    %6 = arith.subf %0, %5 : vector<8x32xf32>
    %7 = arith.mulf %6, %6 : vector<8x32xf32>
    %cst_2 = arith.constant dense<0.000000e+00> : vector<8xf32>
    %8 = vector.multi_reduction <add>, %7, %cst_2 [1] : vector<8x32xf32> to vector<8xf32>
    %9 = vector.shape_cast %8 : vector<8xf32> to vector<8x1xf32>
    %cst_3 = arith.constant 3.200000e+01 : f32
    %10 = vector.broadcast %cst_3 : f32 to vector<8x1xf32>
    %11 = arith.divf %9, %10 : vector<8x1xf32>
    %cst_4 = arith.constant 9.99999974E-6 : f32
    %12 = vector.broadcast %cst_4 : f32 to vector<8x1xf32>
    %13 = arith.addf %11, %12 : vector<8x1xf32>
    %14 = math.rsqrt %13 : vector<8x1xf32>
    %15 = vector.broadcast %14 : vector<8x1xf32> to vector<8x32xf32>
    %16 = arith.mulf %6, %15 : vector<8x32xf32>
    %c0_5 = arith.constant 0 : index
    %c0_6 = arith.constant 0 : index
    %17 = vector.load %arg3[%c0_5, %c0_6] : memref<32x32xf32, #tpu.memory_space<vmem>>, vector<32x32xf32>
    %cst_7 = arith.constant dense<0.000000e+00> : vector<8x32xf32>
    %18 = tpu.matmul %16, %17, %cst_7 {dimension_numbers = #tpu.dot_dimension_numbers<[1], [0], [0], [1], [0, 0, 1, 1], [], []>} : vector<8x32xf32>, vector<32x32xf32>, vector<8x32xf32> -> vector<8x32xf32>
    %c0_8 = arith.constant 0 : index
    %c0_9 = arith.constant 0 : index
    %19 = vector.load %arg4[%c0_8, %c0_9] : memref<1x32xf32, #tpu.memory_space<vmem>>, vector<1x32xf32>
    %20 = vector.broadcast %19 : vector<1x32xf32> to vector<8x32xf32>
    %21 = arith.addf %18, %20 : vector<8x32xf32>
    %22 = math.tanh %21 : vector<8x32xf32>
    %c0_10 = arith.constant 0 : index
    %c0_11 = arith.constant 0 : index
    %23 = vector.load %arg5[%c0_10, %c0_11] : memref<8x32xf32, #tpu.memory_space<vmem>>, vector<8x32xf32>
    tpu.vector_store %arg5[%c0_10, %c0_11], %22 {strides = array<i32>} : memref<8x32xf32, #tpu.memory_space<vmem>>, vector<8x32xf32>,
    return
  }
  func.func @transform_0(%arg0: i32, %arg1: i32) -> (i32, i32) {
    %c0_i32 = arith.constant 0 : i32
    %c0_i32_0 = arith.constant 0 : i32
    return %arg0, %c0_i32 : i32, i32
  }
  func.func @transform_1(%arg0: i32, %arg1: i32) -> (i32, i32) {
    %c0_i32 = arith.constant 0 : i32
    %c0_i32_0 = arith.constant 0 : i32
    return %c0_i32, %arg1 : i32, i32
  }
  func.func @transform_2(%arg0: i32, %arg1: i32) -> (i32, i32) {
    %c0_i32 = arith.constant 0 : i32
    %c0_i32_0 = arith.constant 0 : i32
    return %c0_i32, %arg1 : i32, i32
  }
  func.func @transform_3(%arg0: i32, %arg1: i32) -> (i32, i32) {
    %c0_i32 = arith.constant 0 : i32
    return %arg0, %arg1 : i32, i32
  }
}

module attributes {stable_mosaic.version = 11 : i64} {
  func.func @_cfe_kernel(%arg0: i32, %arg1: i32, %arg2: memref<8x32xf32, #tpu.memory_space<vmem>>, %arg3: memref<32x32xf32, #tpu.memory_space<vmem>>, %arg4: memref<1x32xf32, #tpu.memory_space<vmem>>, %arg5: memref<8x32xf32, #tpu.memory_space<vmem>>) attributes {dimension_semantics = [#tpu.dimension_semantics<parallel>, #tpu.dimension_semantics<parallel>], iteration_bounds = array<i64: 2, 1>, scalar_prefetch = 0 : i64, scratch_operands = 0 : i64, tpu.core_type = #tpu.core_type<tc>, window_params = [{transform_indices = @transform_0, window_bounds = array<i64: 8, 32>}, {transform_indices = @transform_1, window_bounds = array<i64: 32, 32>}, {transform_indices = @transform_2, window_bounds = array<i64: 1, 32>}, {transform_indices = @transform_3, window_bounds = array<i64: 8, 32>}]} {
    %c0 = arith.constant 0 : index
    %c0_0 = arith.constant 0 : index
    %0 = vector.load %arg2[%c0, %c0_0] : memref<8x32xf32, #tpu.memory_space<vmem>>, vector<8x32xf32>
    %cst = arith.constant dense<0.000000e+00> : vector<8xf32>
    %1 = vector.multi_reduction <add>, %0, %cst [1] : vector<8x32xf32> to vector<8xf32>
    %2 = vector.shape_cast %1 : vector<8xf32> to vector<8x1xf32>
    %cst_1 = arith.constant 3.200000e+01 : f32
    %3 = vector.broadcast %cst_1 : f32 to vector<8x1xf32>
    %4 = arith.divf %2, %3 : vector<8x1xf32>
    %5 = vector.broadcast %4 : vector<8x1xf32> to vector<8x32xf32>
    %6 = arith.subf %0, %5 : vector<8x32xf32>
    %7 = arith.mulf %6, %6 : vector<8x32xf32>
    %cst_2 = arith.constant dense<0.000000e+00> : vector<8xf32>
    %8 = vector.multi_reduction <add>, %7, %cst_2 [1] : vector<8x32xf32> to vector<8xf32>
    %9 = vector.shape_cast %8 : vector<8xf32> to vector<8x1xf32>
    %cst_3 = arith.constant 3.200000e+01 : f32
    %10 = vector.broadcast %cst_3 : f32 to vector<8x1xf32>
    %11 = arith.divf %9, %10 : vector<8x1xf32>
    %cst_4 = arith.constant 9.99999974E-6 : f32
    %12 = vector.broadcast %cst_4 : f32 to vector<8x1xf32>
    %13 = arith.addf %11, %12 : vector<8x1xf32>
    %14 = math.rsqrt %13 : vector<8x1xf32>
    %15 = vector.broadcast %14 : vector<8x1xf32> to vector<8x32xf32>
    %16 = arith.mulf %6, %15 : vector<8x32xf32>
    %c0_5 = arith.constant 0 : index
    %c0_6 = arith.constant 0 : index
    %17 = vector.load %arg3[%c0_5, %c0_6] : memref<32x32xf32, #tpu.memory_space<vmem>>, vector<32x32xf32>
    %cst_7 = arith.constant dense<0.000000e+00> : vector<8x32xf32>
    %18 = tpu.matmul %16, %17, %cst_7 {dimension_numbers = #tpu.dot_dimension_numbers<[1], [0], [0], [1], [0, 0, 1, 1], [], []>} : vector<8x32xf32>, vector<32x32xf32>, vector<8x32xf32> -> vector<8x32xf32>
    %c0_8 = arith.constant 0 : index
    %c0_9 = arith.constant 0 : index
    %19 = vector.load %arg4[%c0_8, %c0_9] : memref<1x32xf32, #tpu.memory_space<vmem>>, vector<1x32xf32>
    %20 = vector.broadcast %19 : vector<1x32xf32> to vector<8x32xf32>
    %21 = arith.addf %18, %20 : vector<8x32xf32>
    %22 = math.tanh %21 : vector<8x32xf32>
    %c0_10 = arith.constant 0 : index
    %c0_11 = arith.constant 0 : index
    %23 = vector.load %arg5[%c0_10, %c0_11] : memref<8x32xf32, #tpu.memory_space<vmem>>, vector<8x32xf32>
    tpu.vector_store %arg5[%c0_10, %c0_11], %22 {strides = array<i32>} : memref<8x32xf32, #tpu.memory_space<vmem>>, vector<8x32xf32>,
    return
  }
  func.func @transform_0(%arg0: i32, %arg1: i32) -> (i32, i32) {
    %c0_i32 = arith.constant 0 : i32
    %c0_i32_0 = arith.constant 0 : i32
    return %arg0, %c0_i32 : i32, i32
  }
  func.func @transform_1(%arg0: i32, %arg1: i32) -> (i32, i32) {
    %c0_i32 = arith.constant 0 : i32
    %c0_i32_0 = arith.constant 0 : i32
    return %c0_i32, %arg1 : i32, i32
  }
  func.func @transform_2(%arg0: i32, %arg1: i32) -> (i32, i32) {
    %c0_i32 = arith.constant 0 : i32
    %c0_i32_0 = arith.constant 0 : i32
    return %c0_i32, %arg1 : i32, i32
  }
  func.func @transform_3(%arg0: i32, %arg1: i32) -> (i32, i32) {
    %c0_i32 = arith.constant 0 : i32
    return %arg0, %arg1 : i32, i32
  }
}

</mosaic_0001>

<bundles_post_ra>
// kernel: tpu_custom_call.1
= control target key start
LH: loop header
LB: loop body
LE: loop exit
PB: predicated region body
PF: predicated region fallthrough
CT: control target
= control target key end

     0   :  { %8 = vsyncpa [#allocation3], 0  ;;  %s850_s0 = inlined_call_operand.hbm [shape: f32[16,32], index: 0, kind: input, shape index: {}]   ;;  %s851_s1 = inlined_call_operand.hbm [shape: f32[32,32], index: 1, kind: input, shape index: {}]   ;;  %s852_s2 = inlined_call_operand.vmem [shape: f32[1,32], index: 2, kind: input, shape index: {}]   ;;  %s853_s3 = inlined_call_operand.hbm [shape: f32[16,32], index: 3, kind: output, shape index: {}]  }
   0x1   :  { %10 = vsyncpa [#allocation3 + $0x1], 0 }
   0x2   :  { %11 = vsyncpa [#allocation6], 0 }
   0x3   :  { %12 = vsyncpa [#allocation4], 0 }
   0x4   :  { %14 = vsyncpa [#allocation4 + $0x1], 0  ;;  %s696_s12 = smov 0   ;;  %s698_s13 = smov 0  }
   0x5   :  { %s700_s14 = smov 0   ;;  %s702_s15 = smov 0  }
   0x6   :  { %s704_s16 = smov 0   ;;  %s706_s17 = smov 0  }
   0x7 LB: > { %s424_s18 = sadd.s32 4294967295, %s670_s17   ;;  %p426_p0 = scmp.ge.s32.totalorder %s670_s17, 1  ;;  %s670_s17 = sphi %s706_s17, %s20_s17   ;;  %s666_s16 = sphi %s704_s16, %s864_s16   ;;  %s662_s15 = sphi %s702_s15, %s863_s15   ;;  %s658_s14 = sphi %s700_s14, %s862_s14   ;;  %s654_s13 = sphi %s698_s13, %s861_s13   ;;  %s650_s12 = sphi %s696_s12, %s860_s12  }
   0x8   : > { %p728_p1 = scmp.eq.s32.totalorder %s424_s18, 0  ;;  %p143_p2 = scmp.lt.s32.totalorder %s670_s17, 3 }
   0x9   : > { %s156_s22 = sshll.u32 %s851_s1, 4  ;;  %s672_s24 = smov [#allocation5]   ;;  %s157_s22 = int_to_ptr.hbm [resolvable:$true] %s156_s22 }
   0xa   : > { %p736_p3 = pnand %p426_p0, %p143_p2  ;;  %s158_s25 = sshll.u32 %s672_s24, 4  ;;  %s159_s25 = int_to_ptr.vmem [resolvable:$true] %s158_s25 }
   0xb   : > { %p429_p6 = scmp.ge.s32.totalorder %s670_s17, 2  ;;  %s673_s26 = smov 128  }
   0xc   : > { %p449_p4 = pneg %p736_p3  ;;  %s674_s27 = smov 8  }
   0xd   : > { %s425_s28 = sadd.s32 4294967294, %s670_s17   ;;  %s32_s29 = sadd.s32 1, %s666_s16 }
   0xe   : > { %p450_p5 = pnand %p449_p4, %p728_p1  ;;  %s39_s30 = sadd.s32 1, %s658_s14 }
   0xf   : > { %p34_p7 = scmp.ge.s32.totalorder %s32_s29, 2  ;;  %p46_p8 = scmp.ne.s32.totalorder %s658_s14, %s654_s13 }
  0x10   : > { %452 = dma.hbm_to_vmem [thread:$0]  (!%p450_p5), %s157_s22, 512, %s159_s25, [#allocation6], %s673_s26, %s673_s26, %s674_s27  }
  0x11   : > { %p47_p9 = scmp.eq.s32.totalorder %s670_s17, 0  ;;  %p52_p10 = scmp.ne.s32.totalorder %s654_s13, %s650_s12 }
  0x12   : > { %s866_s29 = smov (%p34_p7, %s32_s29), 0  ;;  %p130_p13 = scmp.eq.s32.totalorder %s424_s18, 1 }
  0x13   : > { %p755_p11 = por %p47_p9, %p46_p8  ;;  %p761_p12 = por %p728_p1, %p52_p10 }
  0x14   : > { %s36_s6 = ssub.s32 %s666_s16, %s866_s29  ;;  %p136_p2 = scmp.eq.s32.totalorder %s425_s28, 1 }
  0x15   : > { %p37_p0 = scmp.eq.s32.totalorder %s36_s6, 0  ;;  %p767_p4 = por %p130_p13, %p46_p8 }
  0x16   : > { %p462_p5 = scmp.lt.s32.totalorder %s670_s17, 2  ;;  %p775_p7 = por %p136_p2, %p52_p10 }
  0x17   : > { %s773_s8 = scalar_select %p37_p0, %s658_s14, %s39_s30  }
  0x18   : > { %s178_s10 = sand.u32 1, %s658_s14   ;;  %s431_s20 = sshll.u32 %s666_s16, 3 }
  0x19   : > { %s430_s11 = sshll.u32 %s178_s10, 3  ;;  %s186_s18 = scalar_lea.hbm %s850_s0, %s431_s20 }
  0x1a   : > { %s182_s24 = scalar_lea.vmem [#allocation2], %s430_s11  ;;  %s188_s26 = sshll.u32 %s186_s18, 4  ;;  %s189_s26 = int_to_ptr.hbm [resolvable:$true] %s188_s26 }
  0x1b   : > { %s190_s25 = sshll.u32 %s182_s24, 4  ;;  %p454_p8 = pnand %p462_p5, %p755_p11  ;;  %s191_s25 = int_to_ptr.vmem [resolvable:$true] %s190_s25 }
  0x1c   : > { %s179_s27 = scalar_lea.sflag [#allocation3], %s178_s10  ;;  %199 = sbr.rel (%p736_p3) target bundleno = 439 (0x1b7), region = 32 }
  0x1d   : > { %456 = dma.hbm_to_vmem [thread:$0]  (!%p454_p8), %s189_s26, 128, %s191_s25, %s179_s27  }
  0x1e   : > { %s789_s28 = sand.u32 (!%p736_p3), 1, %s654_s13  }
  0x1f   : > { %s433_s30 = sshll.u32 (!%p736_p3), %s789_s28, 3  ;;  %s202_s6 = scalar_lea.sflag (!%p736_p3), [#allocation3], %s789_s28 }
  0x20   : > { %s205_s11 = scalar_lea.vmem (!%p736_p3), [#allocation2], %s433_s30 }
  0x21   : > { %637 = dma.done.wait (%p761_p12), %s202_s6, 128  }
  0x22   : > { %639 = vsyncadd (%p761_p12), %s202_s6, 4294967168 }
  0x23   : > { %641 = dma.done.wait (%p728_p1), [#allocation6], 512  }
  0x24   : > { %643 = vsyncadd (%p728_p1), [#allocation6], 4294966784  ;;  %vm241_vm0 = vcmask 261120   ;;  %v240_v0 = vld [vmem:[%s205_s11] sm:$0xff]  ;;  %v675_v2 = vmov 32.0   ;;  %v272_v16 = vld [vmem:[#allocation5 + $0x8] sm:$0xff] }
  0x25   : > { %v242_v1 = vsel %vm241_vm0, %v240_v0, 0.0  ;;  %518 = vrcp.f32 %v675_v2  ;;  %v274_v14 = vld [vmem:[#allocation5 + $0x18] sm:$0xff]  ;;  %v273_v15 = vld [vmem:[#allocation5 + $0x10] sm:$0xff]  ;;  %v271_v17 = vld [vmem:[#allocation5] sm:$0xff]  ;;  %s438_s4 = sshll.u32 %s662_s15, 3  ;;  %s236_s21 = scalar_lea.vmem [#allocation7], %s433_s30 }
  0x26   : > { %243 = vadd.xlane.f32.xlu0 %v242_v1  ;;  %294 = vmatpush.msra.mxu0 %v274_v14  ;;  %v517_v29 = vld [vmem:[%s852_s2] ss:$0 sm:$0xff]  ;;  %s316_s20 = scalar_lea.hbm %s853_s3, %s438_s4  ;;  %s318_s22 = sshll.u32 %s236_s21, 4  ;;  %s319_s22 = int_to_ptr.vmem [resolvable:$true] %s318_s22 }
  0x27   : > { %s320_s18 = sshll.u32 %s316_s20, 4  ;;  %s305_s24 = scalar_lea.sflag [#allocation4], %s789_s28  ;;  %s321_s18 = int_to_ptr.hbm [resolvable:$true] %s320_s18 }
  0x28   : > { %295 = vmatpush.msra.mxu0 %v273_v15  ;;  %s598_s25 = sshra.s32 %s321_s18, 4  ;;  %s604_s6 = scalar_lea.hbm %s853_s3, 16  ;;  %s599_s25 = int_to_ptr.hbm [resolvable:$true] %s598_s25 }
  0x29   : > { %s600_s15 = scalar_lea.hbm %s599_s25, 8  ;;  %p605_p10 = scmp.lt.s32.totalorder %s599_s25, %s853_s3 }
  0x2a   : > { %296 = vmatpush.msra.mxu0 %v272_v16  ;;  %p601_p1 = scmp.ne.s32.totalorder %s599_s25, %s600_s15  ;;  %p606_p11 = scmp.lt.s32.totalorder %s604_s6, %s600_s15 }
  0x2b   : > { %v519_v3 = vpop.eup %518 }
  0x2c   : > { %v246_v4 = vmul.f32 32.0, %v519_v3  ;;  %vm250_vm1 = vweird.f32 %v519_v3  ;;  %297 = vmatpush.msra.mxu0 %v271_v17  ;;  %p602_p3 = pnand %p601_p1, %p767_p4  ;;  %p607_p12 = por %p606_p11, %p605_p10 }
  0x2e   : > { %v247_v5 = vsub.f32 1.0, %v246_v4  ;;  %p603_p9 = pneg %p602_p3 }
  0x30   : > { %v248_v6 = vmul.f32 %v519_v3, %v247_v5  ;;  %p608_p13 = pnand %p607_p12, %p603_p9 }
  0x32   : > { %v249_v7 = vadd.f32 %v519_v3, %v248_v6 }
  0x34   : > { %v251_v8 = vsel %vm250_vm1, %v519_v3, %v249_v7 }
  0x99   : > { %v244_v9 = vpop.xlane.xlu0 %243 }
  0x9a   : > { %v252_v10 = vmul.f32 %v251_v8, %v244_v9 }
  0x9c   : > { %v253_v11 = vsub.f32 %v240_v0, %v252_v10 }
  0x9e   : > { %v254_v12 = vmul.f32 %v253_v11, %v253_v11 }
  0xa0   : > { %v255_v13 = vsel %vm241_vm0, %v254_v12, 0.0 }
  0xa1   : > { %256 = vadd.xlane.f32.xlu0 %v255_v13 }
 0x114   : > { %v257_v18 = vpop.xlane.xlu0 %256 }
 0x115   : > { %v258_v19 = vmul.f32 %v257_v18, %v251_v8 }
 0x117   : > { %v259_v20 = vadd.f32 1e-05, %v258_v19 }
 0x119   : > { %520 = vrsqrt.f32 %v259_v20  ;;  %vm266_vm3 = vweird.f32 %v259_v20 }
 0x11f   : > { %v521_v21 = vpop.eup %520 }
 0x120   : > { %v261_v22 = vmul.f32 %v521_v21, %v259_v20  ;;  %vm267_vm2 = vweird.f32 %v521_v21 }
 0x121   : > { %vm268_vm4 = vmor %vm266_vm3, %vm267_vm2 }
 0x122   : > { %v262_v23 = vmul.f32 %v521_v21, %v261_v22 }
 0x124   : > { %v263_v24 = vmul.f32 0.5, %v262_v23 }
 0x126   : > { %v264_v25 = vsub.f32 1.5, %v263_v24 }
 0x128   : > { %v265_v26 = vmul.f32 %v521_v21, %v264_v25 }
 0x12a   : > { %v269_v27 = vsel %vm268_vm4, %v521_v21, %v265_v26 }
 0x12b   : > { %v270_v28 = vmul.f32 %v269_v27, %v253_v11 }
 0x12d   : > { %436 = vmatmul.msk.f32.vlgmr.msra.gmra.mxu0 %vm241_vm0, %v270_v28 }
 0x1aa   : > { %v299_v30 = vpop.f32.mrf.mxu0 }
 0x1ab   : > { %v300_v31 = vadd.f32 %v517_v29, %v299_v30 }
 0x1ad   : > { %522 = vtanh.f32 %v300_v31 }
 0x1b3   : > { %v523_v32 = vpop.eup %522 }
 0x1b4   : > { %303 = vst.msk [vmem:[%s236_s21] sm:$0xff] %vm241_vm0, %v523_v32 }
 0x1b5   : > { %611 = shalt.err (!%p608_p13)
}
 0x1b6   : > { %447 = dma.vmem_to_hbm [thread:$0]  (%p767_p4), %s319_s22, 128, %s321_s18, %s305_s24  }
 0x1b7 PF: > { %s332_s28 = sand.u32 1, %s650_s12   ;;  %p458_p0 = pnand %p429_p6, %p775_p7 }
 0x1b8   : > { %s333_s19 = scalar_lea.sflag [#allocation4], %s332_s28 }
 0x1b9   : > { %p459_p2 = pneg %p458_p0 }
 0x1bb   : > { %645 = dma.done.wait (%p459_p2), %s333_s19, 128  }
 0x1bc   : > { %647 = vsyncadd (%p459_p2), %s333_s19, 4294967168  ;;  %s20_s17 = sadd.s32 1, %s670_s17   ;;  %s860_s12 = smov %s654_s13 }
 0x1bd   : > { %p17_p5 = scmp.ge.s32.totalorder %s20_s17, 4   ;;  %s861_s13 = smov %s658_s14 }
 0x1be   : > { %s862_s14 = smov %s773_s8  ;;  %s863_s15 = smov %s666_s16 }
 0x1bf   : > { %s864_s16 = smov %s866_s29  ;;  %19 = sbr.rel (!%p17_p5) target bundleno = 7 (0x7), region = 85 }
 0x1c4   :  { %339 = vsyncpa [#allocation3], 1 }
 0x1c5   :  { %341 = vsyncpa [#allocation3 + $0x1], 1 }
 0x1c6   :  { %342 = vsyncpa [#allocation6], 1 }
 0x1c7   :  { %343 = vsyncpa [#allocation4], 1 }
 0x1c8   :  { %345 = vsyncpa [#allocation4 + $0x1], 1 }

// kernel: tpu_custom_call.1
= control target key start
LH: loop header
LB: loop body
LE: loop exit
PB: predicated region body
PF: predicated region fallthrough
CT: control target
= control target key end

     0   :  { %8 = vsyncpa [#allocation3], 0  ;;  %s850_s0 = inlined_call_operand.hbm [shape: f32[16,32], index: 0, kind: input, shape index: {}]   ;;  %s851_s1 = inlined_call_operand.hbm [shape: f32[32,32], index: 1, kind: input, shape index: {}]   ;;  %s852_s2 = inlined_call_operand.vmem [shape: f32[1,32], index: 2, kind: input, shape index: {}]   ;;  %s853_s3 = inlined_call_operand.hbm [shape: f32[16,32], index: 3, kind: output, shape index: {}]  }
   0x1   :  { %10 = vsyncpa [#allocation3 + $0x1], 0 }
   0x2   :  { %11 = vsyncpa [#allocation6], 0 }
   0x3   :  { %12 = vsyncpa [#allocation4], 0 }
   0x4   :  { %14 = vsyncpa [#allocation4 + $0x1], 0  ;;  %s696_s12 = smov 0   ;;  %s698_s13 = smov 0  }
   0x5   :  { %s700_s14 = smov 0   ;;  %s702_s15 = smov 0  }
   0x6   :  { %s704_s16 = smov 0   ;;  %s706_s17 = smov 0  }
   0x7 LB: > { %s424_s18 = sadd.s32 4294967295, %s670_s17   ;;  %p426_p0 = scmp.ge.s32.totalorder %s670_s17, 1  ;;  %s670_s17 = sphi %s706_s17, %s20_s17   ;;  %s666_s16 = sphi %s704_s16, %s864_s16   ;;  %s662_s15 = sphi %s702_s15, %s863_s15   ;;  %s658_s14 = sphi %s700_s14, %s862_s14   ;;  %s654_s13 = sphi %s698_s13, %s861_s13   ;;  %s650_s12 = sphi %s696_s12, %s860_s12  }
   0x8   : > { %p728_p1 = scmp.eq.s32.totalorder %s424_s18, 0  ;;  %p143_p2 = scmp.lt.s32.totalorder %s670_s17, 3 }
   0x9   : > { %s156_s22 = sshll.u32 %s851_s1, 4  ;;  %s672_s24 = smov [#allocation5]   ;;  %s157_s22 = int_to_ptr.hbm [resolvable:$true] %s156_s22 }
   0xa   : > { %p736_p3 = pnand %p426_p0, %p143_p2  ;;  %s158_s25 = sshll.u32 %s672_s24, 4  ;;  %s159_s25 = int_to_ptr.vmem [resolvable:$true] %s158_s25 }
   0xb   : > { %p429_p6 = scmp.ge.s32.totalorder %s670_s17, 2  ;;  %s673_s26 = smov 128  }
   0xc   : > { %p449_p4 = pneg %p736_p3  ;;  %s674_s27 = smov 8  }
   0xd   : > { %s425_s28 = sadd.s32 4294967294, %s670_s17   ;;  %s32_s29 = sadd.s32 1, %s666_s16 }
   0xe   : > { %p450_p5 = pnand %p449_p4, %p728_p1  ;;  %s39_s30 = sadd.s32 1, %s658_s14 }
   0xf   : > { %p34_p7 = scmp.ge.s32.totalorder %s32_s29, 2  ;;  %p46_p8 = scmp.ne.s32.totalorder %s658_s14, %s654_s13 }
  0x10   : > { %452 = dma.hbm_to_vmem [thread:$0]  (!%p450_p5), %s157_s22, 512, %s159_s25, [#allocation6], %s673_s26, %s673_s26, %s674_s27  }
  0x11   : > { %p47_p9 = scmp.eq.s32.totalorder %s670_s17, 0  ;;  %p52_p10 = scmp.ne.s32.totalorder %s654_s13, %s650_s12 }
  0x12   : > { %s866_s29 = smov (%p34_p7, %s32_s29), 0  ;;  %p130_p13 = scmp.eq.s32.totalorder %s424_s18, 1 }
  0x13   : > { %p755_p11 = por %p47_p9, %p46_p8  ;;  %p761_p12 = por %p728_p1, %p52_p10 }
  0x14   : > { %s36_s6 = ssub.s32 %s666_s16, %s866_s29  ;;  %p136_p2 = scmp.eq.s32.totalorder %s425_s28, 1 }
  0x15   : > { %p37_p0 = scmp.eq.s32.totalorder %s36_s6, 0  ;;  %p767_p4 = por %p130_p13, %p46_p8 }
  0x16   : > { %p462_p5 = scmp.lt.s32.totalorder %s670_s17, 2  ;;  %p775_p7 = por %p136_p2, %p52_p10 }
  0x17   : > { %s773_s8 = scalar_select %p37_p0, %s658_s14, %s39_s30  }
  0x18   : > { %s178_s10 = sand.u32 1, %s658_s14   ;;  %s431_s20 = sshll.u32 %s666_s16, 3 }
  0x19   : > { %s430_s11 = sshll.u32 %s178_s10, 3  ;;  %s186_s18 = scalar_lea.hbm %s850_s0, %s431_s20 }
  0x1a   : > { %s182_s24 = scalar_lea.vmem [#allocation2], %s430_s11  ;;  %s188_s26 = sshll.u32 %s186_s18, 4  ;;  %s189_s26 = int_to_ptr.hbm [resolvable:$true] %s188_s26 }
  0x1b   : > { %s190_s25 = sshll.u32 %s182_s24, 4  ;;  %p454_p8 = pnand %p462_p5, %p755_p11  ;;  %s191_s25 = int_to_ptr.vmem [resolvable:$true] %s190_s25 }
  0x1c   : > { %s179_s27 = scalar_lea.sflag [#allocation3], %s178_s10  ;;  %199 = sbr.rel (%p736_p3) target bundleno = 439 (0x1b7), region = 32 }
  0x1d   : > { %456 = dma.hbm_to_vmem [thread:$0]  (!%p454_p8), %s189_s26, 128, %s191_s25, %s179_s27  }
  0x1e   : > { %s789_s28 = sand.u32 (!%p736_p3), 1, %s654_s13  }
  0x1f   : > { %s433_s30 = sshll.u32 (!%p736_p3), %s789_s28, 3  ;;  %s202_s6 = scalar_lea.sflag (!%p736_p3), [#allocation3], %s789_s28 }
  0x20   : > { %s205_s11 = scalar_lea.vmem (!%p736_p3), [#allocation2], %s433_s30 }
  0x21   : > { %637 = dma.done.wait (%p761_p12), %s202_s6, 128  }
  0x22   : > { %639 = vsyncadd (%p761_p12), %s202_s6, 4294967168 }
  0x23   : > { %641 = dma.done.wait (%p728_p1), [#allocation6], 512  }
  0x24   : > { %643 = vsyncadd (%p728_p1), [#allocation6], 4294966784  ;;  %vm241_vm0 = vcmask 261120   ;;  %v240_v0 = vld [vmem:[%s205_s11] sm:$0xff]  ;;  %v675_v2 = vmov 32.0   ;;  %v272_v16 = vld [vmem:[#allocation5 + $0x8] sm:$0xff] }
  0x25   : > { %v242_v1 = vsel %vm241_vm0, %v240_v0, 0.0  ;;  %518 = vrcp.f32 %v675_v2  ;;  %v274_v14 = vld [vmem:[#allocation5 + $0x18] sm:$0xff]  ;;  %v273_v15 = vld [vmem:[#allocation5 + $0x10] sm:$0xff]  ;;  %v271_v17 = vld [vmem:[#allocation5] sm:$0xff]  ;;  %s438_s4 = sshll.u32 %s662_s15, 3  ;;  %s236_s21 = scalar_lea.vmem [#allocation7], %s433_s30 }
  0x26   : > { %243 = vadd.xlane.f32.xlu0 %v242_v1  ;;  %294 = vmatpush.msra.mxu0 %v274_v14  ;;  %v517_v29 = vld [vmem:[%s852_s2] ss:$0 sm:$0xff]  ;;  %s316_s20 = scalar_lea.hbm %s853_s3, %s438_s4  ;;  %s318_s22 = sshll.u32 %s236_s21, 4  ;;  %s319_s22 = int_to_ptr.vmem [resolvable:$true] %s318_s22 }
  0x27   : > { %s320_s18 = sshll.u32 %s316_s20, 4  ;;  %s305_s24 = scalar_lea.sflag [#allocation4], %s789_s28  ;;  %s321_s18 = int_to_ptr.hbm [resolvable:$true] %s320_s18 }
  0x28   : > { %295 = vmatpush.msra.mxu0 %v273_v15  ;;  %s598_s25 = sshra.s32 %s321_s18, 4  ;;  %s604_s6 = scalar_lea.hbm %s853_s3, 16  ;;  %s599_s25 = int_to_ptr.hbm [resolvable:$true] %s598_s25 }
  0x29   : > { %s600_s15 = scalar_lea.hbm %s599_s25, 8  ;;  %p605_p10 = scmp.lt.s32.totalorder %s599_s25, %s853_s3 }
  0x2a   : > { %296 = vmatpush.msra.mxu0 %v272_v16  ;;  %p601_p1 = scmp.ne.s32.totalorder %s599_s25, %s600_s15  ;;  %p606_p11 = scmp.lt.s32.totalorder %s604_s6, %s600_s15 }
  0x2b   : > { %v519_v3 = vpop.eup %518 }
  0x2c   : > { %v246_v4 = vmul.f32 32.0, %v519_v3  ;;  %vm250_vm1 = vweird.f32 %v519_v3  ;;  %297 = vmatpush.msra.mxu0 %v271_v17  ;;  %p602_p3 = pnand %p601_p1, %p767_p4  ;;  %p607_p12 = por %p606_p11, %p605_p10 }
  0x2e   : > { %v247_v5 = vsub.f32 1.0, %v246_v4  ;;  %p603_p9 = pneg %p602_p3 }
  0x30   : > { %v248_v6 = vmul.f32 %v519_v3, %v247_v5  ;;  %p608_p13 = pnand %p607_p12, %p603_p9 }
  0x32   : > { %v249_v7 = vadd.f32 %v519_v3, %v248_v6 }
  0x34   : > { %v251_v8 = vsel %vm250_vm1, %v519_v3, %v249_v7 }
  0x99   : > { %v244_v9 = vpop.xlane.xlu0 %243 }
  0x9a   : > { %v252_v10 = vmul.f32 %v251_v8, %v244_v9 }
  0x9c   : > { %v253_v11 = vsub.f32 %v240_v0, %v252_v10 }
  0x9e   : > { %v254_v12 = vmul.f32 %v253_v11, %v253_v11 }
  0xa0   : > { %v255_v13 = vsel %vm241_vm0, %v254_v12, 0.0 }
  0xa1   : > { %256 = vadd.xlane.f32.xlu0 %v255_v13 }
 0x114   : > { %v257_v18 = vpop.xlane.xlu0 %256 }
 0x115   : > { %v258_v19 = vmul.f32 %v257_v18, %v251_v8 }
 0x117   : > { %v259_v20 = vadd.f32 1e-05, %v258_v19 }
 0x119   : > { %520 = vrsqrt.f32 %v259_v20  ;;  %vm266_vm3 = vweird.f32 %v259_v20 }
 0x11f   : > { %v521_v21 = vpop.eup %520 }
 0x120   : > { %v261_v22 = vmul.f32 %v521_v21, %v259_v20  ;;  %vm267_vm2 = vweird.f32 %v521_v21 }
 0x121   : > { %vm268_vm4 = vmor %vm266_vm3, %vm267_vm2 }
 0x122   : > { %v262_v23 = vmul.f32 %v521_v21, %v261_v22 }
 0x124   : > { %v263_v24 = vmul.f32 0.5, %v262_v23 }
 0x126   : > { %v264_v25 = vsub.f32 1.5, %v263_v24 }
 0x128   : > { %v265_v26 = vmul.f32 %v521_v21, %v264_v25 }
 0x12a   : > { %v269_v27 = vsel %vm268_vm4, %v521_v21, %v265_v26 }
 0x12b   : > { %v270_v28 = vmul.f32 %v269_v27, %v253_v11 }
 0x12d   : > { %436 = vmatmul.msk.f32.vlgmr.msra.gmra.mxu0 %vm241_vm0, %v270_v28 }
 0x1aa   : > { %v299_v30 = vpop.f32.mrf.mxu0 }
 0x1ab   : > { %v300_v31 = vadd.f32 %v517_v29, %v299_v30 }
 0x1ad   : > { %522 = vtanh.f32 %v300_v31 }
 0x1b3   : > { %v523_v32 = vpop.eup %522 }
 0x1b4   : > { %303 = vst.msk [vmem:[%s236_s21] sm:$0xff] %vm241_vm0, %v523_v32 }
 0x1b5   : > { %611 = shalt.err (!%p608_p13)
}
 0x1b6   : > { %447 = dma.vmem_to_hbm [thread:$0]  (%p767_p4), %s319_s22, 128, %s321_s18, %s305_s24  }
 0x1b7 PF: > { %s332_s28 = sand.u32 1, %s650_s12   ;;  %p458_p0 = pnand %p429_p6, %p775_p7 }
 0x1b8   : > { %s333_s19 = scalar_lea.sflag [#allocation4], %s332_s28 }
 0x1b9   : > { %p459_p2 = pneg %p458_p0 }
 0x1bb   : > { %645 = dma.done.wait (%p459_p2), %s333_s19, 128  }
 0x1bc   : > { %647 = vsyncadd (%p459_p2), %s333_s19, 4294967168  ;;  %s20_s17 = sadd.s32 1, %s670_s17   ;;  %s860_s12 = smov %s654_s13 }
 0x1bd   : > { %p17_p5 = scmp.ge.s32.totalorder %s20_s17, 4   ;;  %s861_s13 = smov %s658_s14 }
 0x1be   : > { %s862_s14 = smov %s773_s8  ;;  %s863_s15 = smov %s666_s16 }
 0x1bf   : > { %s864_s16 = smov %s866_s29  ;;  %19 = sbr.rel (!%p17_p5) target bundleno = 7 (0x7), region = 85 }
 0x1c4   :  { %339 = vsyncpa [#allocation3], 1 }
 0x1c5   :  { %341 = vsyncpa [#allocation3 + $0x1], 1 }
 0x1c6   :  { %342 = vsyncpa [#allocation6], 1 }
 0x1c7   :  { %343 = vsyncpa [#allocation4], 1 }
 0x1c8   :  { %345 = vsyncpa [#allocation4 + $0x1], 1 }

</bundles_post_ra>
